<compile_context>
chip_gen: v7x
topology: tpu7x:2x2x1
jax: 0.10.0
libtpu: 0.0.40
codegen_flags: <defaults>
</compile_context>

<pallas_src>
import functools

import jax
import jax.numpy as jnp
from jax import lax
from jax.experimental import pallas as pl
from jax.experimental.pallas import tpu as pltpu


# ----------------------------------------------------------------------------
# Fused MHA kernel: one grid step == one batch element, all heads.
# ----------------------------------------------------------------------------
def _fused_mha_kernel(x_ref, xkv_ref, bias_ref, wq_ref, bq_ref, wkv_ref,
                      bkv_ref, wo_ref, bo_ref, o_ref, *,
                      num_head, qk_size, v_size):
    f32 = jnp.float32
    cdt = jnp.bfloat16  # MXU compute dtype (f32 accumulation)

    x = x_ref[0].astype(cdt)        # (Sq, E)
    xkv = xkv_ref[0].astype(cdt)    # (Sk, E)
    bias = bias_ref[0]              # (Sq, Sk) f32 additive mask bias (0 / -1e9)

    # Q projection (1/sqrt(Dqk) already folded into wq / bq by the wrapper).
    q = jnp.dot(x, wq_ref[...].astype(cdt),
                preferred_element_type=f32) + bq_ref[...]          # (Sq, H*Dqk)
    # Fused K/V projection: one matmul with a lane-dense output.
    kv = jnp.dot(xkv, wkv_ref[...].astype(cdt),
                 preferred_element_type=f32) + bkv_ref[...]        # (Sk, H*Dqk + H*Dv)

    k_all = kv[:, : num_head * qk_size]                            # (Sk, H*Dqk)
    v_all = kv[:, num_head * qk_size:]                             # (Sk, H*Dv)

    q_b = q.astype(cdt)
    k_b = k_all.astype(cdt)
    wo = wo_ref[...].astype(cdt)                                   # (H*Dv, E)

    sq = q.shape[0]
    emb = wo_ref.shape[1]
    acc = jnp.zeros((sq, emb), dtype=f32)

    # Static, fully unrolled loop over heads (num_head is small).
    for h in range(num_head):
        q_h = q_b[:, h * qk_size:(h + 1) * qk_size]                # (Sq, Dqk)
        k_h = k_b[:, h * qk_size:(h + 1) * qk_size]                # (Sk, Dqk)
        v_h = v_all[:, h * v_size:(h + 1) * v_size]                # (Sk, Dv)

        # q @ k^T without materializing a transpose of k.
        s = lax.dot_general(q_h, k_h,
                            dimension_numbers=(((1,), (1,)), ((), ())),
                            preferred_element_type=f32)            # (Sq, Sk)
        s = s + bias                                               # additive mask
        s = s - jnp.max(s, axis=-1, keepdims=True)
        p = jnp.exp(s)
        p = p * pl.reciprocal(jnp.sum(p, axis=-1, keepdims=True), approx=True)

        z_h = jnp.dot(p.astype(cdt), v_h.astype(cdt),
                      preferred_element_type=f32)                  # (Sq, Dv)
        # Fold z_h straight into the output projection (no concat/transpose).
        acc = acc + jnp.dot(z_h.astype(cdt),
                            wo[h * v_size:(h + 1) * v_size, :],
                            preferred_element_type=f32)            # (Sq, E)

    o_ref[0] = (acc + bo_ref[...]).astype(o_ref.dtype)


# ----------------------------------------------------------------------------
# Module-equivalent forward
# ----------------------------------------------------------------------------
def multi_head_attention_forward(params, x, x_k_v, attention_mask, num_head,
                                 qk_size, v_size):
    B, Sq, E = x.shape
    _, Sk, _ = x_k_v.shape

    # Fold the attention scale into the Q projection.
    scale = jnp.float32(1.0 / (qk_size ** 0.5))
    w_q = params["w_q"] * scale
    b_q = (params["b_q"] * scale).reshape(1, -1)
    # Fuse K/V projection weights into one lane-dense matrix.
    w_kv = jnp.concatenate([params["w_k"], params["w_v"]], axis=1)
    b_kv = jnp.concatenate([params["b_k"], params["b_v"]]).reshape(1, -1)
    w_o = params["w_o"]
    b_o = params["b_o"].reshape(1, -1)

    # Additive mask bias: -1e9 where masked, 0 elsewhere (single add in-kernel).
    bias = attention_mask.astype(jnp.float32) * jnp.float32(-1e9)   # (B, Sq, Sk)

    kernel = functools.partial(_fused_mha_kernel, num_head=num_head,
                               qk_size=qk_size, v_size=v_size)

    return pl.pallas_call(
        kernel,
        out_shape=jax.ShapeDtypeStruct((B, Sq, E), x.dtype),
        grid=(B,),
        in_specs=[
            pl.BlockSpec((1, Sq, E), lambda b: (b, 0, 0)),    # x
            pl.BlockSpec((1, Sk, E), lambda b: (b, 0, 0)),    # x_k_v
            pl.BlockSpec((1, Sq, Sk), lambda b: (b, 0, 0)),   # mask bias
            pl.BlockSpec(w_q.shape, lambda b: (0, 0)),        # weights stay resident
            pl.BlockSpec(b_q.shape, lambda b: (0, 0)),
            pl.BlockSpec(w_kv.shape, lambda b: (0, 0)),
            pl.BlockSpec(b_kv.shape, lambda b: (0, 0)),
            pl.BlockSpec(w_o.shape, lambda b: (0, 0)),
            pl.BlockSpec(b_o.shape, lambda b: (0, 0)),
        ],
        out_specs=pl.BlockSpec((1, Sq, E), lambda b: (b, 0, 0)),
        compiler_params=pltpu.CompilerParams(
            dimension_semantics=("parallel",)),
    )(x, x_k_v, bias, w_q, b_q, w_kv, b_kv, w_o, b_o)


# Pure-JAX reference (f32, matches the PyTorch module semantics).
def reference_forward(params, x, x_k_v, attention_mask, num_head, qk_size, v_size):
    B, Sq, E = x.shape
    _, Sk, _ = x_k_v.shape
    q = x @ params["w_q"] + params["b_q"]
    k = x_k_v @ params["w_k"] + params["b_k"]
    v = x_k_v @ params["w_v"] + params["b_v"]
    q = q.reshape(B, Sq, num_head, qk_size).transpose(0, 2, 1, 3)
    k = k.reshape(B, Sk, num_head, qk_size).transpose(0, 2, 1, 3)
    v = v.reshape(B, Sk, num_head, v_size).transpose(0, 2, 1, 3)
    scores = jnp.einsum("bhqd,bhkd->bhqk", q, k) / (qk_size ** 0.5)
    mask = attention_mask[:, None, :, :]
    scores = jnp.where(mask, -1e9, scores)
    atten = jax.nn.softmax(scores, axis=-1)
    z = jnp.einsum("bhqk,bhkd->bhqd", atten, v)
    z = z.transpose(0, 2, 1, 3).reshape(B, Sq, num_head * v_size)
    return z @ params["w_o"] + params["b_o"]


if __name__ == "__main__":
    # Small shapes consistent with the module.
    B, Sq, Sk = 2, 8, 8
    embedding_size, qk_size, v_size, num_head = 32, 16, 16, 4

    key = jax.random.PRNGKey(0)
    ks = jax.random.split(key, 12)

    # Deterministic synthetic parameters (W stored as (in, out); bias (out,)).
    params = {
        "w_q": jax.random.normal(ks[0], (embedding_size, num_head * qk_size), jnp.float32) * 0.1,
        "b_q": jax.random.normal(ks[1], (num_head * qk_size,), jnp.float32) * 0.1,
        "w_k": jax.random.normal(ks[2], (embedding_size, num_head * qk_size), jnp.float32) * 0.1,
        "b_k": jax.random.normal(ks[3], (num_head * qk_size,), jnp.float32) * 0.1,
        "w_v": jax.random.normal(ks[4], (embedding_size, num_head * v_size), jnp.float32) * 0.1,
        "b_v": jax.random.normal(ks[5], (num_head * v_size,), jnp.float32) * 0.1,
        "w_o": jax.random.normal(ks[6], (num_head * v_size, embedding_size), jnp.float32) * 0.1,
        "b_o": jax.random.normal(ks[7], (embedding_size,), jnp.float32) * 0.1,
    }

    x = jax.random.normal(ks[8], (B, Sq, embedding_size), jnp.float32)
    x_k_v = jax.random.normal(ks[9], (B, Sk, embedding_size), jnp.float32)
    # Boolean mask, True == masked out (same convention as torch masked_fill).
    attention_mask = jax.random.bernoulli(ks[10], 0.2, (B, Sq, Sk))

    out = multi_head_attention_forward(
        params, x, x_k_v, attention_mask, num_head, qk_size, v_size)
    out = jax.block_until_ready(out)

    ref = reference_forward(
        params, x, x_k_v, attention_mask, num_head, qk_size, v_size)
    assert out.shape == (B, Sq, embedding_size)
    # bf16 MXU operands + approx reciprocal in the kernel => loosened tolerance
    # vs the f32 reference (per the performance review).
    assert jnp.allclose(out, ref, rtol=2e-2, atol=2e-2), "mismatch vs reference"

    print("KERNEL_OK")
</pallas_src>

<mosaic_0001>
module attributes {stable_mosaic.version = 11 : i64} {
  func.func @_fused_mha_kernel(%arg0: i32, %arg1: memref<1x8x32xf32, #tpu.memory_space<vmem>>, %arg2: memref<1x8x32xf32, #tpu.memory_space<vmem>>, %arg3: memref<1x8x8xf32, #tpu.memory_space<vmem>>, %arg4: memref<32x64xf32, #tpu.memory_space<vmem>>, %arg5: memref<1x64xf32, #tpu.memory_space<vmem>>, %arg6: memref<32x128xf32, #tpu.memory_space<vmem>>, %arg7: memref<1x128xf32, #tpu.memory_space<vmem>>, %arg8: memref<64x32xf32, #tpu.memory_space<vmem>>, %arg9: memref<1x32xf32, #tpu.memory_space<vmem>>, %arg10: memref<1x8x32xf32, #tpu.memory_space<vmem>>) attributes {dimension_semantics = [#tpu.dimension_semantics<parallel>], iteration_bounds = array<i64: 2>, scalar_prefetch = 0 : i64, scratch_operands = 0 : i64, tpu.core_type = #tpu.core_type<tc>, window_params = [{transform_indices = @transform_0, window_bounds = array<i64: 1, 8, 32>}, {transform_indices = @transform_1, window_bounds = array<i64: 1, 8, 32>}, {transform_indices = @transform_2, window_bounds = array<i64: 1, 8, 8>}, {pipeline_mode = #tpu.pipeline_mode<synchronous>, transform_indices = @transform_3, window_bounds = array<i64: 32, 64>}, {pipeline_mode = #tpu.pipeline_mode<synchronous>, transform_indices = @transform_4, window_bounds = array<i64: 1, 64>}, {pipeline_mode = #tpu.pipeline_mode<synchronous>, transform_indices = @transform_5, window_bounds = array<i64: 32, 128>}, {pipeline_mode = #tpu.pipeline_mode<synchronous>, transform_indices = @transform_6, window_bounds = array<i64: 1, 128>}, {pipeline_mode = #tpu.pipeline_mode<synchronous>, transform_indices = @transform_7, window_bounds = array<i64: 64, 32>}, {pipeline_mode = #tpu.pipeline_mode<synchronous>, transform_indices = @transform_8, window_bounds = array<i64: 1, 32>}, {transform_indices = @transform_9, window_bounds = array<i64: 1, 8, 32>}]} {
    %c0 = arith.constant 0 : index
    %c0_0 = arith.constant 0 : index
    %c0_1 = arith.constant 0 : index
    %0 = vector.load %arg1[%c0, %c0_0, %c0_1] : memref<1x8x32xf32, #tpu.memory_space<vmem>>, vector<1x8x32xf32>
    %1 = vector.shape_cast %0 : vector<1x8x32xf32> to vector<8x32xf32>
    %2 = arith.truncf %1 : vector<8x32xf32> to vector<8x32xbf16>
    %c0_2 = arith.constant 0 : index
    %c0_3 = arith.constant 0 : index
    %c0_4 = arith.constant 0 : index
    %3 = vector.load %arg2[%c0_2, %c0_3, %c0_4] : memref<1x8x32xf32, #tpu.memory_space<vmem>>, vector<1x8x32xf32>
    %4 = vector.shape_cast %3 : vector<1x8x32xf32> to vector<8x32xf32>
    %5 = arith.truncf %4 : vector<8x32xf32> to vector<8x32xbf16>
    %c0_5 = arith.constant 0 : index
    %c0_6 = arith.constant 0 : index
    %c0_7 = arith.constant 0 : index
    %6 = vector.load %arg3[%c0_5, %c0_6, %c0_7] : memref<1x8x8xf32, #tpu.memory_space<vmem>>, vector<1x8x8xf32>
    %7 = vector.shape_cast %6 : vector<1x8x8xf32> to vector<8x8xf32>
    %c0_8 = arith.constant 0 : index
    %c0_9 = arith.constant 0 : index
    %8 = vector.load %arg4[%c0_8, %c0_9] : memref<32x64xf32, #tpu.memory_space<vmem>>, vector<32x64xf32>
    %9 = arith.truncf %8 : vector<32x64xf32> to vector<32x64xbf16>
    %cst = arith.constant dense<0.000000e+00> : vector<8x64xf32>
    %10 = tpu.matmul %2, %9, %cst {dimension_numbers = #tpu.dot_dimension_numbers<[1], [0], [0], [1], [0, 0, 1, 1], [], []>} : vector<8x32xbf16>, vector<32x64xbf16>, vector<8x64xf32> -> vector<8x64xf32>
    %c0_10 = arith.constant 0 : index
    %c0_11 = arith.constant 0 : index
    %11 = vector.load %arg5[%c0_10, %c0_11] : memref<1x64xf32, #tpu.memory_space<vmem>>, vector<1x64xf32>
    %12 = vector.broadcast %11 : vector<1x64xf32> to vector<8x64xf32>
    %13 = arith.addf %10, %12 : vector<8x64xf32>
    %c0_12 = arith.constant 0 : index
    %c0_13 = arith.constant 0 : index
    %14 = vector.load %arg6[%c0_12, %c0_13] : memref<32x128xf32, #tpu.memory_space<vmem>>, vector<32x128xf32>
    %15 = arith.truncf %14 : vector<32x128xf32> to vector<32x128xbf16>
    %cst_14 = arith.constant dense<0.000000e+00> : vector<8x128xf32>
    %16 = tpu.matmul %5, %15, %cst_14 {dimension_numbers = #tpu.dot_dimension_numbers<[1], [0], [0], [1], [0, 0, 1, 1], [], []>} : vector<8x32xbf16>, vector<32x128xbf16>, vector<8x128xf32> -> vector<8x128xf32>
    %c0_15 = arith.constant 0 : index
    %c0_16 = arith.constant 0 : index
    %17 = vector.load %arg7[%c0_15, %c0_16] : memref<1x128xf32, #tpu.memory_space<vmem>>, vector<1x128xf32>
    %18 = vector.broadcast %17 : vector<1x128xf32> to vector<8x128xf32>
    %19 = arith.addf %16, %18 : vector<8x128xf32>
    %20 = vector.extract_strided_slice %19 {offsets = [0, 0], sizes = [8, 64], strides = [1, 1]} : vector<8x128xf32> to vector<8x64xf32>
    %21 = vector.extract_strided_slice %19 {offsets = [0, 64], sizes = [8, 64], strides = [1, 1]} : vector<8x128xf32> to vector<8x64xf32>
    %22 = arith.truncf %13 : vector<8x64xf32> to vector<8x64xbf16>
    %23 = arith.truncf %20 : vector<8x64xf32> to vector<8x64xbf16>
    %c0_17 = arith.constant 0 : index
    %c0_18 = arith.constant 0 : index
    %24 = vector.load %arg8[%c0_17, %c0_18] : memref<64x32xf32, #tpu.memory_space<vmem>>, vector<64x32xf32>
    %25 = arith.truncf %24 : vector<64x32xf32> to vector<64x32xbf16>
    %cst_19 = arith.constant 0.000000e+00 : f32
    %26 = vector.broadcast %cst_19 : f32 to vector<8x32xf32>
    %27 = vector.extract_strided_slice %22 {offsets = [0, 0], sizes = [8, 16], strides = [1, 1]} : vector<8x64xbf16> to vector<8x16xbf16>
    %28 = vector.extract_strided_slice %23 {offsets = [0, 0], sizes = [8, 16], strides = [1, 1]} : vector<8x64xbf16> to vector<8x16xbf16>
    %29 = vector.extract_strided_slice %21 {offsets = [0, 0], sizes = [8, 16], strides = [1, 1]} : vector<8x64xf32> to vector<8x16xf32>
    %cst_20 = arith.constant dense<0.000000e+00> : vector<8x8xf32>
    %30 = tpu.matmul %27, %28, %cst_20 {dimension_numbers = #tpu.dot_dimension_numbers<[1], [1], [0], [0], [0, 0, 1, 0], [], []>} : vector<8x16xbf16>, vector<8x16xbf16>, vector<8x8xf32> -> vector<8x8xf32>
    %31 = arith.addf %30, %7 : vector<8x8xf32>
    %cst_21 = arith.constant dense<0xFF800000> : vector<8xf32>
    %32 = vector.multi_reduction <maximumf>, %31, %cst_21 [1] : vector<8x8xf32> to vector<8xf32>
    %33 = vector.shape_cast %32 : vector<8xf32> to vector<8x1xf32>
    %34 = vector.broadcast %33 : vector<8x1xf32> to vector<8x8xf32>
    %35 = arith.subf %31, %34 : vector<8x8xf32>
    %36 = math.exp %35 : vector<8x8xf32>
    %cst_22 = arith.constant dense<0.000000e+00> : vector<8xf32>
    %37 = vector.multi_reduction <add>, %36, %cst_22 [1] : vector<8x8xf32> to vector<8xf32>
    %38 = vector.shape_cast %37 : vector<8xf32> to vector<8x1xf32>
    %39 = tpu.reciprocal %38 {approx = true} : vector<8x1xf32> -> vector<8x1xf32>
    %40 = vector.broadcast %39 : vector<8x1xf32> to vector<8x8xf32>
    %41 = arith.mulf %36, %40 : vector<8x8xf32>
    %42 = arith.truncf %41 : vector<8x8xf32> to vector<8x8xbf16>
    %43 = arith.truncf %29 : vector<8x16xf32> to vector<8x16xbf16>
    %cst_23 = arith.constant dense<0.000000e+00> : vector<8x16xf32>
    %44 = tpu.matmul %42, %43, %cst_23 {dimension_numbers = #tpu.dot_dimension_numbers<[1], [0], [0], [1], [0, 0, 1, 1], [], []>} : vector<8x8xbf16>, vector<8x16xbf16>, vector<8x16xf32> -> vector<8x16xf32>
    %45 = arith.truncf %44 : vector<8x16xf32> to vector<8x16xbf16>
    %46 = vector.extract_strided_slice %25 {offsets = [0, 0], sizes = [16, 32], strides = [1, 1]} : vector<64x32xbf16> to vector<16x32xbf16>
    %cst_24 = arith.constant dense<0.000000e+00> : vector<8x32xf32>
    %47 = tpu.matmul %45, %46, %cst_24 {dimension_numbers = #tpu.dot_dimension_numbers<[1], [0], [0], [1], [0, 0, 1, 1], [], []>} : vector<8x16xbf16>, vector<16x32xbf16>, vector<8x32xf32> -> vector<8x32xf32>
    %48 = arith.addf %26, %47 : vector<8x32xf32>
    %49 = vector.extract_strided_slice %22 {offsets = [0, 16], sizes = [8, 16], strides = [1, 1]} : vector<8x64xbf16> to vector<8x16xbf16>
    %50 = vector.extract_strided_slice %23 {offsets = [0, 16], sizes = [8, 16], strides = [1, 1]} : vector<8x64xbf16> to vector<8x16xbf16>
    %51 = vector.extract_strided_slice %21 {offsets = [0, 16], sizes = [8, 16], strides = [1, 1]} : vector<8x64xf32> to vector<8x16xf32>
    %cst_25 = arith.constant dense<0.000000e+00> : vector<8x8xf32>
    %52 = tpu.matmul %49, %50, %cst_25 {dimension_numbers = #tpu.dot_dimension_numbers<[1], [1], [0], [0], [0, 0, 1, 0], [], []>} : vector<8x16xbf16>, vector<8x16xbf16>, vector<8x8xf32> -> vector<8x8xf32>
    %53 = arith.addf %52, %7 : vector<8x8xf32>
    %cst_26 = arith.constant dense<0xFF800000> : vector<8xf32>
    %54 = vector.multi_reduction <maximumf>, %53, %cst_26 [1] : vector<8x8xf32> to vector<8xf32>
    %55 = vector.shape_cast %54 : vector<8xf32> to vector<8x1xf32>
    %56 = vector.broadcast %55 : vector<8x1xf32> to vector<8x8xf32>
    %57 = arith.subf %53, %56 : vector<8x8xf32>
    %58 = math.exp %57 : vector<8x8xf32>
    %cst_27 = arith.constant dense<0.000000e+00> : vector<8xf32>
    %59 = vector.multi_reduction <add>, %58, %cst_27 [1] : vector<8x8xf32> to vector<8xf32>
    %60 = vector.shape_cast %59 : vector<8xf32> to vector<8x1xf32>
    %61 = tpu.reciprocal %60 {approx = true} : vector<8x1xf32> -> vector<8x1xf32>
    %62 = vector.broadcast %61 : vector<8x1xf32> to vector<8x8xf32>
    %63 = arith.mulf %58, %62 : vector<8x8xf32>
    %64 = arith.truncf %63 : vector<8x8xf32> to vector<8x8xbf16>
    %65 = arith.truncf %51 : vector<8x16xf32> to vector<8x16xbf16>
    %cst_28 = arith.constant dense<0.000000e+00> : vector<8x16xf32>
    %66 = tpu.matmul %64, %65, %cst_28 {dimension_numbers = #tpu.dot_dimension_numbers<[1], [0], [0], [1], [0, 0, 1, 1], [], []>} : vector<8x8xbf16>, vector<8x16xbf16>, vector<8x16xf32> -> vector<8x16xf32>
    %67 = arith.truncf %66 : vector<8x16xf32> to vector<8x16xbf16>
    %68 = vector.extract_strided_slice %25 {offsets = [16, 0], sizes = [16, 32], strides = [1, 1]} : vector<64x32xbf16> to vector<16x32xbf16>
    %cst_29 = arith.constant dense<0.000000e+00> : vector<8x32xf32>
    %69 = tpu.matmul %67, %68, %cst_29 {dimension_numbers = #tpu.dot_dimension_numbers<[1], [0], [0], [1], [0, 0, 1, 1], [], []>} : vector<8x16xbf16>, vector<16x32xbf16>, vector<8x32xf32> -> vector<8x32xf32>
    %70 = arith.addf %48, %69 : vector<8x32xf32>
    %71 = vector.extract_strided_slice %22 {offsets = [0, 32], sizes = [8, 16], strides = [1, 1]} : vector<8x64xbf16> to vector<8x16xbf16>
    %72 = vector.extract_strided_slice %23 {offsets = [0, 32], sizes = [8, 16], strides = [1, 1]} : vector<8x64xbf16> to vector<8x16xbf16>
    %73 = vector.extract_strided_slice %21 {offsets = [0, 32], sizes = [8, 16], strides = [1, 1]} : vector<8x64xf32> to vector<8x16xf32>
    %cst_30 = arith.constant dense<0.000000e+00> : vector<8x8xf32>
    %74 = tpu.matmul %71, %72, %cst_30 {dimension_numbers = #tpu.dot_dimension_numbers<[1], [1], [0], [0], [0, 0, 1, 0], [], []>} : vector<8x16xbf16>, vector<8x16xbf16>, vector<8x8xf32> -> vector<8x8xf32>
    %75 = arith.addf %74, %7 : vector<8x8xf32>
    %cst_31 = arith.constant dense<0xFF800000> : vector<8xf32>
    %76 = vector.multi_reduction <maximumf>, %75, %cst_31 [1] : vector<8x8xf32> to vector<8xf32>
    %77 = vector.shape_cast %76 : vector<8xf32> to vector<8x1xf32>
    %78 = vector.broadcast %77 : vector<8x1xf32> to vector<8x8xf32>
    %79 = arith.subf %75, %78 : vector<8x8xf32>
    %80 = math.exp %79 : vector<8x8xf32>
    %cst_32 = arith.constant dense<0.000000e+00> : vector<8xf32>
    %81 = vector.multi_reduction <add>, %80, %cst_32 [1] : vector<8x8xf32> to vector<8xf32>
    %82 = vector.shape_cast %81 : vector<8xf32> to vector<8x1xf32>
    %83 = tpu.reciprocal %82 {approx = true} : vector<8x1xf32> -> vector<8x1xf32>
    %84 = vector.broadcast %83 : vector<8x1xf32> to vector<8x8xf32>
    %85 = arith.mulf %80, %84 : vector<8x8xf32>
    %86 = arith.truncf %85 : vector<8x8xf32> to vector<8x8xbf16>
    %87 = arith.truncf %73 : vector<8x16xf32> to vector<8x16xbf16>
    %cst_33 = arith.constant dense<0.000000e+00> : vector<8x16xf32>
    %88 = tpu.matmul %86, %87, %cst_33 {dimension_numbers = #tpu.dot_dimension_numbers<[1], [0], [0], [1], [0, 0, 1, 1], [], []>} : vector<8x8xbf16>, vector<8x16xbf16>, vector<8x16xf32> -> vector<8x16xf32>
    %89 = arith.truncf %88 : vector<8x16xf32> to vector<8x16xbf16>
    %90 = vector.extract_strided_slice %25 {offsets = [32, 0], sizes = [16, 32], strides = [1, 1]} : vector<64x32xbf16> to vector<16x32xbf16>
    %cst_34 = arith.constant dense<0.000000e+00> : vector<8x32xf32>
    %91 = tpu.matmul %89, %90, %cst_34 {dimension_numbers = #tpu.dot_dimension_numbers<[1], [0], [0], [1], [0, 0, 1, 1], [], []>} : vector<8x16xbf16>, vector<16x32xbf16>, vector<8x32xf32> -> vector<8x32xf32>
    %92 = arith.addf %70, %91 : vector<8x32xf32>
    %93 = vector.extract_strided_slice %22 {offsets = [0, 48], sizes = [8, 16], strides = [1, 1]} : vector<8x64xbf16> to vector<8x16xbf16>
    %94 = vector.extract_strided_slice %23 {offsets = [0, 48], sizes = [8, 16], strides = [1, 1]} : vector<8x64xbf16> to vector<8x16xbf16>
    %95 = vector.extract_strided_slice %21 {offsets = [0, 48], sizes = [8, 16], strides = [1, 1]} : vector<8x64xf32> to vector<8x16xf32>
    %cst_35 = arith.constant dense<0.000000e+00> : vector<8x8xf32>
    %96 = tpu.matmul %93, %94, %cst_35 {dimension_numbers = #tpu.dot_dimension_numbers<[1], [1], [0], [0], [0, 0, 1, 0], [], []>} : vector<8x16xbf16>, vector<8x16xbf16>, vector<8x8xf32> -> vector<8x8xf32>
    %97 = arith.addf %96, %7 : vector<8x8xf32>
    %cst_36 = arith.constant dense<0xFF800000> : vector<8xf32>
    %98 = vector.multi_reduction <maximumf>, %97, %cst_36 [1] : vector<8x8xf32> to vector<8xf32>
    %99 = vector.shape_cast %98 : vector<8xf32> to vector<8x1xf32>
    %100 = vector.broadcast %99 : vector<8x1xf32> to vector<8x8xf32>
    %101 = arith.subf %97, %100 : vector<8x8xf32>
    %102 = math.exp %101 : vector<8x8xf32>
    %cst_37 = arith.constant dense<0.000000e+00> : vector<8xf32>
    %103 = vector.multi_reduction <add>, %102, %cst_37 [1] : vector<8x8xf32> to vector<8xf32>
    %104 = vector.shape_cast %103 : vector<8xf32> to vector<8x1xf32>
    %105 = tpu.reciprocal %104 {approx = true} : vector<8x1xf32> -> vector<8x1xf32>
    %106 = vector.broadcast %105 : vector<8x1xf32> to vector<8x8xf32>
    %107 = arith.mulf %102, %106 : vector<8x8xf32>
    %108 = arith.truncf %107 : vector<8x8xf32> to vector<8x8xbf16>
    %109 = arith.truncf %95 : vector<8x16xf32> to vector<8x16xbf16>
    %cst_38 = arith.constant dense<0.000000e+00> : vector<8x16xf32>
    %110 = tpu.matmul %108, %109, %cst_38 {dimension_numbers = #tpu.dot_dimension_numbers<[1], [0], [0], [1], [0, 0, 1, 1], [], []>} : vector<8x8xbf16>, vector<8x16xbf16>, vector<8x16xf32> -> vector<8x16xf32>
    %111 = arith.truncf %110 : vector<8x16xf32> to vector<8x16xbf16>
    %112 = vector.extract_strided_slice %25 {offsets = [48, 0], sizes = [16, 32], strides = [1, 1]} : vector<64x32xbf16> to vector<16x32xbf16>
    %cst_39 = arith.constant dense<0.000000e+00> : vector<8x32xf32>
    %113 = tpu.matmul %111, %112, %cst_39 {dimension_numbers = #tpu.dot_dimension_numbers<[1], [0], [0], [1], [0, 0, 1, 1], [], []>} : vector<8x16xbf16>, vector<16x32xbf16>, vector<8x32xf32> -> vector<8x32xf32>
    %114 = arith.addf %92, %113 : vector<8x32xf32>
    %c0_40 = arith.constant 0 : index
    %c0_41 = arith.constant 0 : index
    %115 = vector.load %arg9[%c0_40, %c0_41] : memref<1x32xf32, #tpu.memory_space<vmem>>, vector<1x32xf32>
    %116 = vector.broadcast %115 : vector<1x32xf32> to vector<8x32xf32>
    %117 = arith.addf %114, %116 : vector<8x32xf32>
    %c0_42 = arith.constant 0 : index
    %c0_43 = arith.constant 0 : index
    %c0_44 = arith.constant 0 : index
    %118 = vector.load %arg10[%c0_42, %c0_43, %c0_44] : memref<1x8x32xf32, #tpu.memory_space<vmem>>, vector<1x8x32xf32>
    %119 = vector.shape_cast %118 : vector<1x8x32xf32> to vector<8x32xf32>
    %120 = vector.shape_cast %117 : vector<8x32xf32> to vector<1x8x32xf32>
    tpu.vector_store %arg10[%c0_42, %c0_43, %c0_44], %120 {strides = array<i32>} : memref<1x8x32xf32, #tpu.memory_space<vmem>>, vector<1x8x32xf32>,
    return
  }
  func.func @transform_0(%arg0: i32) -> (i32, i32, i32) {
    %c0_i32 = arith.constant 0 : i32
    %c0_i32_0 = arith.constant 0 : i32
    %c0_i32_1 = arith.constant 0 : i32
    return %arg0, %c0_i32, %c0_i32_0 : i32, i32, i32
  }
  func.func @transform_1(%arg0: i32) -> (i32, i32, i32) {
    %c0_i32 = arith.constant 0 : i32
    %c0_i32_0 = arith.constant 0 : i32
    %c0_i32_1 = arith.constant 0 : i32
    return %arg0, %c0_i32, %c0_i32_0 : i32, i32, i32
  }
  func.func @transform_2(%arg0: i32) -> (i32, i32, i32) {
    %c0_i32 = arith.constant 0 : i32
    %c0_i32_0 = arith.constant 0 : i32
    %c0_i32_1 = arith.constant 0 : i32
    return %arg0, %c0_i32, %c0_i32_0 : i32, i32, i32
  }
  func.func @transform_3(%arg0: i32) -> (i32, i32) {
    %c0_i32 = arith.constant 0 : i32
    %c0_i32_0 = arith.constant 0 : i32
    %c0_i32_1 = arith.constant 0 : i32
    return %c0_i32, %c0_i32_0 : i32, i32
  }
  func.func @transform_4(%arg0: i32) -> (i32, i32) {
    %c0_i32 = arith.constant 0 : i32
    %c0_i32_0 = arith.constant 0 : i32
    %c0_i32_1 = arith.constant 0 : i32
    return %c0_i32, %c0_i32_0 : i32, i32
  }
  func.func @transform_5(%arg0: i32) -> (i32, i32) {
    %c0_i32 = arith.constant 0 : i32
    %c0_i32_0 = arith.constant 0 : i32
    %c0_i32_1 = arith.constant 0 : i32
    return %c0_i32, %c0_i32_0 : i32, i32
  }
  func.func @transform_6(%arg0: i32) -> (i32, i32) {
    %c0_i32 = arith.constant 0 : i32
    %c0_i32_0 = arith.constant 0 : i32
    %c0_i32_1 = arith.constant 0 : i32
    return %c0_i32, %c0_i32_0 : i32, i32
  }
  func.func @transform_7(%arg0: i32) -> (i32, i32) {
    %c0_i32 = arith.constant 0 : i32
    %c0_i32_0 = arith.constant 0 : i32
    %c0_i32_1 = arith.constant 0 : i32
    return %c0_i32, %c0_i32_0 : i32, i32
  }
  func.func @transform_8(%arg0: i32) -> (i32, i32) {
    %c0_i32 = arith.constant 0 : i32
    %c0_i32_0 = arith.constant 0 : i32
    %c0_i32_1 = arith.constant 0 : i32
    return %c0_i32, %c0_i32_0 : i32, i32
  }
  func.func @transform_9(%arg0: i32) -> (i32, i32, i32) {
    %c0_i32 = arith.constant 0 : i32
    %c0_i32_0 = arith.constant 0 : i32
    %c0_i32_1 = arith.constant 0 : i32
    return %arg0, %c0_i32, %c0_i32_0 : i32, i32, i32
  }
}

</mosaic_0001>

<bundles_post_ra>
// kernel: tpu_custom_call.1
= control target key start
LH: loop header
LB: loop body
LE: loop exit
PB: predicated region body
PF: predicated region fallthrough
CT: control target
= control target key end

     0   :  { %s1963_s0 = inlined_call_operand.vmem [shape: f32[2,8,32], index: 0, kind: input, shape index: {}]   ;;  %s1964_s1 = inlined_call_operand.vmem [shape: f32[2,8,32], index: 1, kind: input, shape index: {}]   ;;  %s1965_s2 = inlined_call_operand.hbm [shape: f32[2,8,8], index: 2, kind: input, shape index: {}]   ;;  %s1966_s3 = inlined_call_operand.vmem [shape: f32[32,64], index: 3, kind: input, shape index: {}]   ;;  %s1967_s4 = inlined_call_operand.vmem [shape: f32[1,64], index: 4, kind: input, shape index: {}]   ;;  %s1968_s5 = inlined_call_operand.vmem [shape: f32[32,128], index: 5, kind: input, shape index: {}]   ;;  %s1969_s6 = inlined_call_operand.vmem [shape: f32[1,128], index: 6, kind: input, shape index: {}]   ;;  %s1970_s7 = inlined_call_operand.vmem [shape: f32[64,32], index: 7, kind: input, shape index: {}]   ;;  %s1971_s8 = inlined_call_operand.vmem [shape: f32[1,32], index: 8, kind: input, shape index: {}]   ;;  %s1972_s9 = inlined_call_operand.hbm [shape: f32[2,8,32], index: 9, kind: output, shape index: {}]  }
   0x1   :  { %1976 = sst [smem:[#allocation10_spill]] %s1964_s1 }
   0x2   :  { %1977 = sst [smem:[#allocation11_spill]] %s1965_s2 }
   0x3   :  { %14 = vsyncpa [#allocation3], 0 }
   0x4   :  { %16 = vsyncpa [#allocation3 + $0x1], 0 }
   0x5   :  { %17 = vsyncpa [#allocation4], 0 }
   0x6   :  { %19 = vsyncpa [#allocation4 + $0x1], 0  ;;  %s1630_s30 = smov 0   ;;  %s1632_s10 = smov 0  }
   0x7   :  { %s1634_s11 = smov 0   ;;  %s1636_s12 = smov 0  }
   0x8 LB: > { %1978 = sst [smem:[#allocation8_spill]] %s1563_s11  ;;  %s1651_s13 = sadd.s32 4294967295, %s1567_s12   ;;  %s1567_s12 = sphi %s1636_s12, %s1997_s12   ;;  %s1563_s11 = sphi %s1634_s11, %s1994_s11   ;;  %s1559_s10 = sphi %s1632_s10, %s1996_s10   ;;  %s1555_s30 = sphi %s1630_s30, %s1995_s30  }
   0x9   : > { %s1251_s14 = sadd.s32 4294967294, %s1567_s12   ;;  %s1655_s15 = sadd.s32 1, %s1567_s12  }
   0xa   : > { %s84_s16 = sadd.s32 1, %s1563_s11  ;;  %s81_s17 = ssub.s32 %s1567_s12, %s1655_s15 }
   0xb   : > { %p91_p0 = scmp.ne.s32.totalorder %s1563_s11, %s1559_s10  ;;  %p82_p1 = scmp.eq.s32.totalorder %s81_s17, 0 }
   0xc   : > { %p92_p2 = scmp.eq.s32.totalorder %s1567_s12, 0  ;;  %p97_p3 = scmp.ne.s32.totalorder %s1559_s10, %s1555_s30 }
   0xd   : > { %p98_p4 = scmp.eq.s32.totalorder %s1651_s13, 0  ;;  %p247_p7 = scmp.eq.s32.totalorder %s1651_s13, 1 }
   0xe   : > { %s1667_s18 = scalar_select %p82_p1, %s1563_s11, %s84_s16  }
   0xf   : > { %p1669_p5 = por %p92_p2, %p91_p0  ;;  %p1673_p6 = por %p98_p4, %p97_p3 }
  0x10   : > { %1979 = sst [smem:[#allocation9_spill]] %s1667_s18  ;;  %p253_p8 = scmp.eq.s32.totalorder %s1251_s14, 1 }
  0x11   : > { %p1412_p10 = scmp.lt.s32.totalorder %s1567_s12, 2  ;;  %p1680_p11 = por %p247_p7, %p91_p0 }
  0x12   : > { %p1684_p12 = por %p253_p8, %p97_p3  ;;  %s305_s23 = sand.u32 1, %s1563_s11  }
  0x13   : > { %s1982_s21 = scalar_select %p1680_p11, 1, 0 }
  0x14   : > { %s1983_s22 = scalar_select %p1684_p12, 1, 0 }
  0x15   : > { %s1255_s24 = sshll.u32 %s1567_s12, 7  ;;  %s1254_s25 = sshll.u32 %s305_s23, 3 }
  0x16   : > { %s1984_s2 = sld [smem:[#allocation11_spill]]  ;;  %s309_s29 = scalar_lea.vmem [#allocation2], %s1254_s25 }
  0x17   : > { %s316_s14 = sshll.u32 %s309_s29, 4  ;;  %p1697_p13 = pnand %p1412_p10, %p1669_p5  ;;  %s1701_s14 = int_to_ptr.vmem [resolvable:$true] %s316_s14 }
  0x18   : > { %s306_s17 = scalar_lea.sflag [#allocation3], %s305_s23 }
  0x19   : > { %p1473_p3 = pneg %p1697_p13 }
  0x1c   : > { %s1693_s28 = scalar_lea.hbm %s1984_s2, %s1255_s24  ;;  %s1476_s26 = scalar_lea.hbm %s1984_s2, 256 }
  0x1d   : > { %s1471_s24 = scalar_lea.hbm %s1693_s28, 128  ;;  %p1477_p5 = scmp.lt.u32.totalorder %s1693_s28, %s1984_s2 }
  0x1e   : > { %p1472_p2 = scmp.ne.s32.totalorder %s1693_s28, %s1471_s24  ;;  %p1478_p8 = scmp.lt.u32.totalorder %s1476_s26, %s1471_s24 }
  0x1f   : > { %p1480_p9 = scmp.lt.u32.totalorder %s1471_s24, %s1693_s28 }
  0x20   : > { %p1474_p4 = pnand %p1473_p3, %p1472_p2  ;;  %p1479_p10 = por %p1478_p8, %p1477_p5 }
  0x22   : > { %p1475_p7 = pneg %p1474_p4  ;;  %p1481_p0 = por %p1480_p9, %p1479_p10 }
  0x24   : > { %p1482_p1 = pnand %p1481_p0, %p1475_p7 }
  0x26   : > { %1485 = shalt.err (!%p1482_p1)
}
  0x27   : > { %s1486_s23 = scalar_lea.vmem %s1701_s14, 128  ;;  %s1569_s19 = smov [#allocation2]  }
  0x28   : > { %p1487_p2 = scmp.ne.s32.totalorder %s1701_s14, %s1486_s23  ;;  %s1491_s25 = sshll.u32 %s1569_s19, 4  ;;  %s1492_s25 = int_to_ptr.vmem [resolvable:$false] %s1491_s25 }
  0x29   : > { %s1493_s27 = scalar_lea.vmem %s1492_s25, 256  ;;  %p1494_p11 = scmp.lt.s32.totalorder %s1701_s14, %s1492_s25 }
  0x2a   : > { %p1489_p4 = pnand %p1487_p2, %p1473_p3  ;;  %p1495_p5 = scmp.lt.s32.totalorder %s1493_s27, %s1486_s23 }
  0x2c   : > { %p1490_p12 = pneg %p1489_p4  ;;  %p1496_p8 = por %p1495_p5, %p1494_p11 }
  0x2e   : > { %p1497_p9 = pnand %p1496_p8, %p1490_p12 }
  0x30   : > { %1500 = shalt.err (!%p1497_p9)
}
  0x31   : > { %1407 = dma.hbm_to_vmem [thread:$0]  (!%p1697_p13), %s1693_s28, 128, %s1701_s14, %s306_s17  }
  0x32   : > { %p1986_p0 = scmp.lt.s32.totalorder %s1567_s12, 3  ;;  %p1987_p1 = scmp.ge.s32.totalorder %s1567_s12, 1 }
  0x34   : > { %p322_p3 = pnand %p1987_p1, %p1986_p0 }
  0x35   : > { %s1735_s24 = sand.u32 (!%p322_p3), 1, %s1559_s10  }
  0x36   : > { %325 = sbr.rel (%p322_p3) target bundleno = 2676 (0xa74), region = 56  ;;  %s1974_s26 = sshll.u32 (!%p322_p3), %s1735_s24, 3 }
  0x37   : > { %s328_s29 = scalar_lea.sflag (!%p322_p3), [#allocation3], %s1735_s24  ;;  %s1741_s16 = scalar_lea.vmem (!%p322_p3), [#allocation2], %s1974_s26 }
  0x3d   : > { %1546 = dma.done.wait (%p1673_p6), %s328_s29, 128  }
  0x3e   : > { %1548 = vsyncadd (%p1673_p6), %s328_s29, 4294967168  ;;  %p374_p11 = scmp.lt.s32.totalorder %s1651_s13, 1  ;;  %v1570_v0 = vmov 0.0   ;;  %vm1571_vm0 = vmmov 0   ;;  %v445_v1 = vld [vmem:[%s1968_s5] sm:$0xff]  ;;  %v446_v2 = vld [vmem:[%s1968_s5 + $0x8] sm:$0xff] }
  0x3f   : > { %1320 = vmatprep.subr.bf16.mxu1 %v1570_v0  ;;  %1312 = vmatprep.subr.bf16.mxu0 %v1570_v0  ;;  %v447_v3 = vld [vmem:[%s1968_s5 + $0x10] sm:$0xff]  ;;  %s1988_s1 = sld [smem:[#allocation10_spill]]  ;;  %v449_v4 = vpack.c.bf16 %v446_v2, %v445_v1  ;;  %v448_v5 = vld [vmem:[%s1968_s5 + $0x18] sm:$0xff]  ;;  %v388_v6 = vld [vmem:[%s1966_s3] sm:$0xff]  ;;  %vm401_vm1 = vcmask 261120   ;;  %vm515_vm2 = vcmask 130048  }
  0x40   : > { %1324 = vmatprep.mubr.msk.bf16.mxu1 %vm1571_vm0, %v1570_v0  ;;  %s375_s28 = scalar_select %p374_p11, %s1651_s13, 1  ;;  %1316 = vmatprep.mubr.msk.bf16.mxu0 %vm1571_vm0, %v1570_v0  ;;  %v389_v7 = vld [vmem:[%s1966_s3 + $0x8] sm:$0xff]  ;;  %v390_v9 = vld [vmem:[%s1966_s3 + $0x10] sm:$0xff]  ;;  %v391_v10 = vld [vmem:[%s1966_s3 + $0x18] sm:$0xff]  ;;  %v450_v11 = vpack.c.bf16 %v448_v5, %v447_v3  ;;  %vm562_vm3 = vcmask 64512   ;;  %vm581_vm4 = vcmask 1043456  }
  0x41   : > { %v392_v8 = vpack.c.bf16 %v389_v7, %v388_v6  ;;  %1321 = vmatpush3.bf16.msra.mxu1 %v449_v4  ;;  %v393_v13 = vpack.c.bf16 %v391_v10, %v390_v9  ;;  %v1263_v17 = vld [vmem:[%s1969_s6] ss:$0 sm:$0xff]  ;;  %s1574_s17 = smov 48   ;;  %s1575_s20 = smov 96   ;;  %v505_v1 = vld [vmem:[%s1970_s7 + $0x10] sm:$0xff]  ;;  %v506_v2 = vld [vmem:[%s1970_s7 + $0x18] sm:$0xff] }
  0x42   : > { %s1259_s14 = sshll.u32 %s375_s28, 3  ;;  %1322 = vmatprep.subr.bf16.mxu1 %v1570_v0  ;;  %v1261_v18 = vld [vmem:[%s1967_s4] ss:$0 sm:$0xff]  ;;  %s1572_s28 = smov 112   ;;  %v512_v3 = vpack.c.bf16 %v506_v2, %v505_v1 }
  0x43   : > { %s377_s27 = scalar_lea.vmem %s1963_s0, %s1259_s14  ;;  %1313 = vmatpush3.bf16.msra.mxu0 %v392_v8  ;;  %v1820_v35 = vld [vmem:[%s1741_s16] sm:$0xff]  ;;  %s1573_s16 = smov 64  }
  0x44   : > { %v383_v14 = vld [vmem:[%s377_s27] sm:$0xff]  ;;  %1314 = vmatprep.subr.bf16.mxu0 %v1570_v0  ;;  %v504_v8 = vld [vmem:[%s1970_s7 + $0x8] sm:$0xff]  ;;  %s1577_s18 = smov 80   ;;  %s1279_s11 = sshll.u32 %s1651_s13, 7 }
  0x45   : > { %s381_s2 = scalar_lea.vmem %s1988_s1, %s1259_s14  ;;  %1323 = vmatpush3.bf16.msra.mxu1 %v450_v11  ;;  %v384_v16 = vpack.c.bf16 %v383_v14, %v383_v14  ;;  %v503_v7 = vld [vmem:[%s1970_s7] sm:$0xff]  ;;  %s1989_s1 = sshll.u32 %s1735_s24, 3 }
  0x46   : > { %v385_v12 = vld [vmem:[%s381_s2] sm:$0xff]  ;;  %1334 = vmatprep.subr.bf16.mxu1 %v1570_v0  ;;  %v511_v11 = vpack.c.bf16 %v504_v8, %v503_v7  ;;  %s1576_s2 = smov 32   ;;  %s1144_s13 = scalar_lea.sflag [#allocation4], %s1735_s24 }
  0x47   : > { %v386_v15 = vpack.c.bf16 %v385_v12, %v385_v12  ;;  %1315 = vmatpush3.bf16.msra.mxu0 %v393_v13  ;;  %p1990_p12 = scmp.ne.s32.totalorder %s1982_s21, 0 }
  0x48   : > { %1328 = vmatprep.subr.bf16.mxu0 %v1570_v0 }
  0x49   : > { %1325 = vmatmul.mubr.msk.bf16.vlgmr.msra.gmra.mrb[0].mxu1 %vm401_vm1, %v386_v15 }
  0x4a   : > { %1317 = vmatmul.mubr.msk.bf16.vlgmr.msra.gmra.mrb[0].mxu0 %vm401_vm1, %v384_v16  ;;  %1336 = vmatprep.mubr.msk.bf16.mxu1 %vm1571_vm0, %v1570_v0 }
  0x4b   : > { %1330 = vmatprep.mubr.msk.bf16.mxu0 %vm1571_vm0, %v1570_v0 }
 0x11c   : > { %v495_v19 = vpop.f32.mrb[0].mxu1 }
 0x11d   : > { %v496_v20 = vadd.f32 %v1263_v17, %v495_v19  ;;  %v1326_v21 = vpop.f32.mrb[1].mxu1  ;;  %v439_v22 = vpop.f32.mrb[0].mxu0 }
 0x11e   : > { %v498_v23 = vpop.f32.mrb[2].mxu1  ;;  %v440_v24 = vadd.f32 %v1261_v18, %v439_v22  ;;  %v1318_v25 = vpop.f32.mrb[1].mxu0 }
 0x11f   : > { %v1801_v26 = vpack.c.bf16 %v496_v20, %v496_v20  ;;  %v1327_v27 = vpop.f32.mrb[3].mxu1  ;;  %v442_v28 = vpop.f32.mrb[2].mxu0 }
 0x120   : > { %v1319_v29 = vpop.f32.mrb[3].mxu0  ;;  %v1804_v30 = vpack.c.bf16 %v440_v24, %v440_v24 }
 0x121   : > { %629 = vrot.lane.b32.xlu0 %v1801_v26, %s1572_s28  ;;  %v520_v31 = vsel %vm515_vm2, %v1801_v26, 0 }
 0x122   : > { %1329 = vmatpush3.bf16.xpose.msra.mxu0 %v520_v31 }
 0x123   : > { %1340 = vmatprep.subr.bf16.mxu0 %v1570_v0 }
 0x125   : > { %627 = vrot.lane.b32.xlu0 %v1804_v30, %s1572_s28 }
 0x129   : > { %1331 = vmatmul.mubr.msk.bf16.vlgmr.msra.gmra.mrb[4].mxu0 %vm515_vm2, %v1804_v30 }
 0x12a   : > { %1342 = vmatprep.mubr.msk.bf16.mxu0 %vm1571_vm0, %v1570_v0 }
 0x193   : > { %v630_v32 = vpop.permute.xlu0 %629 }
 0x194   : > { %v635_v33 = vsel %vm515_vm2, %v630_v32, 0 }
 0x195   : > { %1341 = vmatpush3.bf16.xpose.msra.mxu0 %v635_v33 }
 0x196   : > { %1352 = vmatprep.subr.bf16.mxu0 %v1570_v0 }
 0x197   : > { %v628_v34 = vpop.permute.xlu0 %627 }
 0x19c   : > { %1343 = vmatmul.mubr.msk.bf16.vlgmr.msra.gmra.mrb[8].mxu0 %vm515_vm2, %v628_v34 }
 0x19d   : > { %1354 = vmatprep.mubr.msk.bf16.mxu0 %vm1571_vm0, %v1570_v0  ;;  %1353 = vmatpush3.bf16.msra.mxu0 %v512_v3 }
 0x19e   : > { %1364 = vmatprep.subr.bf16.mxu0 %v1570_v0 }
 0x1fc   : > { %v556_v36 = vpop.f32.mrb[4].mxu0 }
 0x1fd   : > { %v557_v37 = vadd.f32 %v556_v36, %v1820_v35  ;;  %v1332_v38 = vpop.f32.mrb[5].mxu0 }
 0x1fe   : > { %v559_v39 = vpop.f32.mrb[6].mxu0 }
 0x1ff   : > { %v1333_v40 = vpop.f32.mrb[7].mxu0  ;;  %v563_v41 = vsel %vm562_vm3, %v557_v37, -inf }
 0x200   : > { %564 = vmax.xlane.f32.xlu1 %v563_v41 }
 0x26f   : > { %v671_v42 = vpop.f32.mrb[8].mxu0 }
 0x270   : > { %v672_v43 = vadd.f32 %v671_v42, %v1820_v35  ;;  %v1344_v44 = vpop.f32.mrb[9].mxu0 }
 0x271   : > { %v674_v45 = vpop.f32.mrb[10].mxu0 }
 0x272   : > { %v1345_v46 = vpop.f32.mrb[11].mxu0  ;;  %v677_v47 = vsel %vm562_vm3, %v672_v43, -inf }
 0x273   : > { %678 = vmax.xlane.f32.xlu1 %v677_v47 }
 0x284   : > { %576 = vrot.lane.b32.xlu1 %v1801_v26, %s1573_s16  ;;  %s1918_s16 = scalar_lea.hbm %s1972_s9, %s1279_s11 }
 0x28d   : > { %v565_v48 = vpop.xlane.xlu1 %564 }
 0x28e   : > { %v566_v49 = vsub.f32 %v557_v37, %v565_v48 }
 0x290   : > { %v567_v50 = vmul.f32 1.442695, %v566_v49 }
 0x292   : > { %1455 = vpow2.f32 %v567_v50 }
 0x29c   : > { %v1456_v51 = vpop.eup %1455 }
 0x29d   : > { %v569_v52 = vsel %vm562_vm3, %v1456_v51, 0.0 }
 0x29e   : > { %570 = vadd.xlane.f32.xlu0 %v569_v52 }
 0x300   : > { %v679_v53 = vpop.xlane.xlu1 %678 }
 0x301   : > { %v680_v54 = vsub.f32 %v672_v43, %v679_v53 }
 0x303   : > { %v681_v55 = vmul.f32 1.442695, %v680_v54 }
 0x304   : > { %v577_v56 = vpop.permute.xlu1 %576 }
 0x305   : > { %1457 = vpow2.f32 %v681_v55  ;;  %v583_v57 = vsel %vm581_vm4, %v577_v56, 0 }
 0x306   : > { %1335 = vmatpush3.bf16.msra.mxu1 %v583_v57  ;;  %v507_v57 = vld [vmem:[%s1970_s7 + $0x20] sm:$0xff] }
 0x307   : > { %1346 = vmatprep.subr.bf16.mxu1 %v1570_v0 }
 0x30f   : > { %v1458_v58 = vpop.eup %1457 }
 0x310   : > { %v683_v59 = vsel %vm562_vm3, %v1458_v58, 0.0 }
 0x311   : > { %684 = vadd.xlane.f32.xlu1 %v683_v59 }
 0x322   : > { %689 = vrot.lane.b32.xlu1 %v1801_v26, %s1574_s17 }
 0x326   : > { %826 = vrot.lane.b32.xlu1 %v1801_v26, %s1575_s20 }
 0x32a   : > { %824 = vrot.lane.b32.xlu1 %v1804_v30, %s1575_s20  ;;  %s1578_s20 = smov 16  }
 0x32b   : > { %v571_v60 = vpop.xlane.xlu0 %570 }
 0x32c   : > { %1459 = vrcp.f32 %v571_v60 }
 0x336   : > { %v1460_v61 = vpop.eup %1459 }
 0x337   : > { %v573_v62 = vmul.f32 %v1460_v61, %v1456_v51 }
 0x339   : > { %v574_v63 = vpack.c.bf16 %v573_v62, %v573_v62 }
 0x33b   : > { %1337 = vmatmul.mubr.msk.bf16.vlgmr.msra.gmra.mrb[4].mxu1 %vm562_vm3, %v574_v63 }
 0x33c   : > { %1348 = vmatprep.mubr.msk.bf16.mxu1 %vm1571_vm0, %v1570_v0 }
 0x39e   : > { %v685_v4 = vpop.xlane.xlu1 %684 }
 0x39f   : > { %1461 = vrcp.f32 %v685_v4 }
 0x3a2   : > { %v690_v5 = vpop.permute.xlu1 %689 }
 0x3a3   : > { %v695_v6 = vsel %vm581_vm4, %v690_v5, 0 }
 0x3a4   : > { %1347 = vmatpush3.bf16.msra.mxu1 %v695_v6 }
 0x3a5   : > { %1358 = vmatprep.subr.bf16.mxu1 %v1570_v0 }
 0x3a6   : > { %v827_v18 = vpop.permute.xlu1 %826 }
 0x3a7   : > { %v832_v23 = vsel %vm515_vm2, %v827_v18, 0 }
 0x3a9   : > { %v1462_v9 = vpop.eup %1461 }
 0x3aa   : > { %v687_v10 = vmul.f32 %v1462_v9, %v1458_v58  ;;  %v825_v25 = vpop.permute.xlu1 %824  ;;  %v508_v58 = vld [vmem:[%s1970_s7 + $0x28] sm:$0xff] }
 0x3ab   : > { %v513_v59 = vpack.c.bf16 %v508_v58, %v507_v57 }
 0x3ac   : > { %v688_v12 = vpack.c.bf16 %v687_v10, %v687_v10 }
 0x3ae   : > { %1349 = vmatmul.mubr.msk.bf16.vlgmr.msra.gmra.mrb[8].mxu1 %vm562_vm3, %v688_v12 }
 0x3af   : > { %1359 = vmatpush3.bf16.msra.mxu1 %v511_v11  ;;  %1360 = vmatprep.mubr.msk.bf16.mxu1 %vm1571_vm0, %v1570_v0 }
 0x3b0   : > { %1370 = vmatprep.subr.bf16.mxu1 %v1570_v0 }
 0x40e   : > { %v619_v13 = vpop.f32.mrb[4].mxu1 }
 0x40f   : > { %v625_v14 = vpack.c.bf16 %v619_v13, %v619_v13  ;;  %v1338_v15 = vpop.f32.mrb[5].mxu1 }
 0x410   : > { %v622_v16 = vpop.f32.mrb[6].mxu1 }
 0x411   : > { %v1339_v17 = vpop.f32.mrb[7].mxu1  ;;  %1361 = vmatmul.mubr.msk.bf16.vlgmr.msra.gmra.mrb[12].mxu1 %vm515_vm2, %v625_v14 }
 0x412   : > { %1372 = vmatprep.mubr.msk.bf16.mxu1 %vm1571_vm0, %v1570_v0 }
 0x481   : > { %v731_v19 = vpop.f32.mrb[8].mxu1 }
 0x482   : > { %v737_v20 = vpack.c.bf16 %v731_v19, %v731_v19  ;;  %v1350_v21 = vpop.f32.mrb[9].mxu1 }
 0x483   : > { %v734_v22 = vpop.f32.mrb[10].mxu1 }
 0x484   : > { %v1351_v24 = vpop.f32.mrb[11].mxu1  ;;  %1355 = vmatmul.mubr.msk.bf16.vlgmr.msra.gmra.mrb[12].mxu0 %vm515_vm2, %v737_v20 }
 0x485   : > { %1365 = vmatpush3.bf16.xpose.msra.mxu0 %v832_v23  ;;  %1366 = vmatprep.mubr.msk.bf16.mxu0 %vm1571_vm0, %v1570_v0 }
 0x486   : > { %1376 = vmatprep.subr.bf16.mxu0 %v1570_v0 }
 0x48c   : > { %1367 = vmatmul.mubr.msk.bf16.vlgmr.msra.gmra.mrb[16].mxu0 %vm515_vm2, %v825_v25 }
 0x48d   : > { %1378 = vmatprep.mubr.msk.bf16.mxu0 %vm1571_vm0, %v1570_v0  ;;  %1377 = vmatpush3.bf16.msra.mxu0 %v513_v59 }
 0x48e   : > { %1388 = vmatprep.subr.bf16.mxu0 %v1570_v0 }
 0x4e4   : > { %v818_v27 = vpop.f32.mrb[12].mxu1 }
 0x4e5   : > { %v1362_v28 = vpop.f32.mrb[13].mxu1 }
 0x4e6   : > { %v821_v29 = vpop.f32.mrb[14].mxu1 }
 0x4e7   : > { %v1363_v31 = vpop.f32.mrb[15].mxu1 }
 0x557   : > { %v775_v32 = vpop.f32.mrb[12].mxu0 }
 0x558   : > { %v1867_v33 = vadd.f32 %v818_v27, %v775_v32  ;;  %v1356_v34 = vpop.f32.mrb[13].mxu0  ;;  %v1277_v32 = vld [vmem:[%s1971_s8] ss:$0 sm:$0xff] }
 0x559   : > { %v778_v36 = vpop.f32.mrb[14].mxu0 }
 0x55a   : > { %v1357_v37 = vpop.f32.mrb[15].mxu0 }
 0x55f   : > { %v868_v38 = vpop.f32.mrb[16].mxu0 }
 0x560   : > { %v869_v39 = vadd.f32 %v868_v38, %v1820_v35  ;;  %v1368_v40 = vpop.f32.mrb[17].mxu0 }
 0x561   : > { %v871_v41 = vpop.f32.mrb[18].mxu0 }
 0x562   : > { %v1369_v42 = vpop.f32.mrb[19].mxu0  ;;  %v874_v43 = vsel %vm562_vm3, %v869_v39, -inf }
 0x563   : > { %875 = vmax.xlane.f32.xlu0 %v874_v43 }
 0x579   : > { %886 = vrot.lane.b32.xlu0 %v1801_v26, %s1576_s2  ;;  %s373_s2 = scalar_lea.vmem [#allocation5], %s1989_s1 }
 0x57d   : > { %981 = vrot.lane.b32.xlu0 %v1801_v26, %s1577_s18 }
 0x581   : > { %979 = vrot.lane.b32.xlu0 %v1804_v30, %s1577_s18  ;;  %s1157_s18 = sshll.u32 %s373_s2, 4  ;;  %s1920_s18 = int_to_ptr.vmem [resolvable:$true] %s1157_s18 }
 0x582   : > { %s1501_s17 = scalar_lea.vmem %s1920_s18, 128 }
 0x583   : > { %p1502_p6 = scmp.ne.s32.totalorder %s1920_s18, %s1501_s17 }
 0x585   : > { %p1503_p13 = pnand %p1502_p6, %p1990_p12 }
 0x587   : > { %p1504_p7 = pneg %p1503_p13 }
 0x5f0   : > { %v876_v44 = vpop.xlane.xlu0 %875 }
 0x5f1   : > { %v877_v45 = vsub.f32 %v869_v39, %v876_v44 }
 0x5f3   : > { %v878_v46 = vmul.f32 1.442695, %v877_v45 }
 0x5f4   : > { %v887_v47 = vpop.permute.xlu0 %886 }
 0x5f5   : > { %1463 = vpow2.f32 %v878_v46  ;;  %v892_v48 = vsel %vm581_vm4, %v887_v47, 0 }
 0x5f6   : > { %1371 = vmatpush3.bf16.msra.mxu1 %v892_v48 }
 0x5f7   : > { %1382 = vmatprep.subr.bf16.mxu1 %v1570_v0 }
 0x5f8   : > { %v982_v54 = vpop.permute.xlu0 %981 }
 0x5f9   : > { %v987_v55 = vsel %vm515_vm2, %v982_v54, 0 }
 0x5fc   : > { %v980_v56 = vpop.permute.xlu0 %979 }
 0x5ff   : > { %v1464_v49 = vpop.eup %1463 }
 0x600   : > { %v880_v50 = vsel %vm562_vm3, %v1464_v49, 0.0 }
 0x601   : > { %881 = vadd.xlane.f32.xlu1 %v880_v50 }
 0x68e   : > { %v882_v51 = vpop.xlane.xlu1 %881 }
 0x68f   : > { %1465 = vrcp.f32 %v882_v51 }
 0x699   : > { %v1466_v52 = vpop.eup %1465 }
 0x69a   : > { %v884_v53 = vmul.f32 %v1466_v52, %v1464_v49 }
 0x69c   : > { %v885_v30 = vpack.c.bf16 %v884_v53, %v884_v53 }
 0x69e   : > { %1373 = vmatmul.mubr.msk.bf16.vlgmr.msra.gmra.mrb[16].mxu1 %vm562_vm3, %v885_v30 }
 0x69f   : > { %1383 = vmatpush3.bf16.xpose.msra.mxu1 %v987_v55  ;;  %1384 = vmatprep.mubr.msk.bf16.mxu1 %vm1571_vm0, %v1570_v0 }
 0x6a0   : > { %1394 = vmatprep.subr.bf16.mxu1 %v1570_v0 }
 0x6a6   : > { %1385 = vmatmul.mubr.msk.bf16.vlgmr.msra.gmra.mrb[20].mxu1 %vm515_vm2, %v980_v56 }
 0x6a7   : > { %1396 = vmatprep.mubr.msk.bf16.mxu1 %vm1571_vm0, %v1570_v0 }
 0x771   : > { %v928_v60 = vpop.f32.mrb[16].mxu1 }
 0x772   : > { %v934_v61 = vpack.c.bf16 %v928_v60, %v928_v60  ;;  %v1374_v62 = vpop.f32.mrb[17].mxu1 }
 0x773   : > { %v931_v63 = vpop.f32.mrb[18].mxu1 }
 0x774   : > { %v1375_v1 = vpop.f32.mrb[19].mxu1  ;;  %1379 = vmatmul.mubr.msk.bf16.vlgmr.msra.gmra.mrb[20].mxu0 %vm515_vm2, %v934_v61 }
 0x775   : > { %1390 = vmatprep.mubr.msk.bf16.mxu0 %vm1571_vm0, %v1570_v0  ;;  %v509_v0 = vld [vmem:[%s1970_s7 + $0x30] sm:$0xff] }
 0x779   : > { %v1023_v2 = vpop.f32.mrb[20].mxu1 }
 0x77a   : > { %v1024_v3 = vadd.f32 %v1023_v2, %v1820_v35  ;;  %v1386_v4 = vpop.f32.mrb[21].mxu1  ;;  %v510_v35 = vld [vmem:[%s1970_s7 + $0x38] sm:$0xff] }
 0x77b   : > { %v1026_v5 = vpop.f32.mrb[22].mxu1  ;;  %v514_v13 = vpack.c.bf16 %v510_v35, %v509_v0 }
 0x77c   : > { %v1387_v6 = vpop.f32.mrb[23].mxu1  ;;  %v1029_v7 = vsel %vm562_vm3, %v1024_v3, -inf }
 0x77d   : > { %1030 = vmax.xlane.f32.xlu0 %v1029_v7  ;;  %1395 = vmatpush3.bf16.msra.mxu1 %v514_v13 }
 0x80a   : > { %v1031_v8 = vpop.xlane.xlu0 %1030 }
 0x80b   : > { %v1032_v9 = vsub.f32 %v1024_v3, %v1031_v8 }
 0x80d   : > { %v1033_v10 = vmul.f32 1.442695, %v1032_v9 }
 0x80f   : > { %1467 = vpow2.f32 %v1033_v10 }
 0x819   : > { %v1468_v11 = vpop.eup %1467 }
 0x81a   : > { %v1035_v12 = vsel %vm562_vm3, %v1468_v11, 0.0 }
 0x81b   : > { %1036 = vadd.xlane.f32.xlu1 %v1035_v12 }
 0x82c   : > { %1041 = vrot.lane.b32.xlu1 %v1801_v26, %s1578_s20  ;;  %s1579_s20 = smov [#allocation5]  }
 0x82d   : > { %s1505_s23 = sshll.u32 %s1579_s20, 4  ;;  %s1506_s23 = int_to_ptr.vmem [resolvable:$false] %s1505_s23 }
 0x82e   : > { %s1507_s19 = scalar_lea.vmem %s1506_s23, 256  ;;  %p1508_p10 = scmp.lt.s32.totalorder %s1920_s18, %s1506_s23 }
 0x82f   : > { %p1509_p2 = scmp.lt.s32.totalorder %s1507_s19, %s1501_s17 }
 0x831   : > { %p1510_p4 = por %p1509_p2, %p1508_p10 }
 0x833   : > { %p1511_p5 = pnand %p1510_p4, %p1504_p7 }
 0x847   : > { %v972_v14 = vpop.f32.mrb[20].mxu0 }
 0x848   : > { %v978_v15 = vadd.f32 %v972_v14, %v1867_v33  ;;  %v1380_v16 = vpop.f32.mrb[21].mxu0 }
 0x849   : > { %v975_v17 = vpop.f32.mrb[22].mxu0 }
 0x84a   : > { %v1381_v18 = vpop.f32.mrb[23].mxu0 }
 0x8a8   : > { %v1037_v19 = vpop.xlane.xlu1 %1036 }
 0x8a9   : > { %1469 = vrcp.f32 %v1037_v19 }
 0x8ac   : > { %v1042_v26 = vpop.permute.xlu1 %1041 }
 0x8ad   : > { %v1047_v20 = vsel %vm581_vm4, %v1042_v26, 0 }
 0x8ae   : > { %1389 = vmatpush3.bf16.msra.mxu0 %v1047_v20 }
 0x8b3   : > { %v1470_v21 = vpop.eup %1469 }
 0x8b4   : > { %v1039_v22 = vmul.f32 %v1470_v21, %v1468_v11 }
 0x8b6   : > { %v1040_v23 = vpack.c.bf16 %v1039_v22, %v1039_v22 }
 0x8b8   : > { %1391 = vmatmul.mubr.msk.bf16.vlgmr.msra.gmra.mrb[24].mxu0 %vm562_vm3, %v1040_v23 }
 0x98b   : > { %v1083_v24 = vpop.f32.mrb[24].mxu0 }
 0x98c   : > { %v1089_v25 = vpack.c.bf16 %v1083_v24, %v1083_v24  ;;  %v1392_v27 = vpop.f32.mrb[25].mxu0 }
 0x98d   : > { %v1086_v28 = vpop.f32.mrb[26].mxu0 }
 0x98e   : > { %v1393_v29 = vpop.f32.mrb[27].mxu0  ;;  %1397 = vmatmul.mubr.msk.bf16.vlgmr.msra.gmra.mrb[24].mxu1 %vm515_vm2, %v1089_v25 }
 0xa61   : > { %v1127_v31 = vpop.f32.mrb[24].mxu1 }
 0xa62   : > { %v1133_v33 = vadd.f32 %v1127_v31, %v978_v15  ;;  %v1398_v34 = vpop.f32.mrb[25].mxu1 }
 0xa63   : > { %v1130_v36 = vpop.f32.mrb[26].mxu1 }
 0xa64   : > { %v1141_v37 = vadd.f32 %v1277_v32, %v1133_v33  ;;  %v1399_v38 = vpop.f32.mrb[27].mxu1 }
 0xa66   : > { %1142 = vst.msk [vmem:[%s373_s2] sm:$0xff] %vm401_vm1, %v1141_v37 }
 0xa67   : > { %1514 = shalt.err (!%p1511_p5)
}
 0xa68   : > { %s1515_s24 = scalar_lea.hbm %s1918_s16, 128  ;;  %s1519_s26 = scalar_lea.hbm %s1972_s9, 256 }
 0xa69   : > { %p1516_p8 = scmp.ne.s32.totalorder %s1918_s16, %s1515_s24  ;;  %p1520_p1 = scmp.lt.u32.totalorder %s1918_s16, %s1972_s9 }
 0xa6a   : > { %p1521_p3 = scmp.lt.u32.totalorder %s1519_s26, %s1515_s24  ;;  %p1523_p6 = scmp.lt.u32.totalorder %s1515_s24, %s1918_s16 }
 0xa6b   : > { %p1517_p9 = pnand %p1516_p8, %p1990_p12 }
 0xa6c   : > { %p1522_p11 = por %p1521_p3, %p1520_p1 }
 0xa6d   : > { %p1518_p0 = pneg %p1517_p9 }
 0xa6e   : > { %p1524_p13 = por %p1523_p6, %p1522_p11 }
 0xa70   : > { %p1525_p7 = pnand %p1524_p13, %p1518_p0 }
 0xa72   : > { %1528 = shalt.err (!%p1525_p7)
}
 0xa73   : > { %1402 = dma.vmem_to_hbm [thread:$0]  (%p1990_p12), %s1920_s18, 128, %s1918_s16, %s1144_s13  }
 0xa74 PF: > { %s1169_s1 = sand.u32 1, %s1555_s30   ;;  %p1991_p10 = scmp.ne.s32.totalorder %s1983_s22, 0 }
 0xa75   : > { %p1992_p2 = scmp.ge.s32.totalorder %s1567_s12, 2  ;;  %s1170_s2 = scalar_lea.sflag [#allocation4], %s1169_s1 }
 0xa77   : > { %p1409_p4 = pnand %p1992_p2, %p1991_p10 }
 0xa79   : > { %1550 = dma.done.wait (!%p1409_p4), %s1170_s2, 128  }
 0xa7a   : > { %1552 = vsyncadd (!%p1409_p4), %s1170_s2, 4294967168  ;;  %s1993_s14 = sld [smem:[#allocation8_spill]]  ;;  %s1994_s11 = sld [smem:[#allocation9_spill]] }
 0xa7b   : > { %p22_p5 = scmp.ge.s32.totalorder %s1655_s15, 4   ;;  %s1995_s30 = smov %s1559_s10 }
 0xa7c   : > { %s1997_s12 = smov %s1655_s15 }
 0xa7d   :  { %24 = sbr.rel (!%p22_p5) target bundleno = 8 (0x8), region = 107 }
 0xa80   : > { %s1996_s10 = smov %s1993_s14 }
 0xa84   :  { %1175 = vsyncpa [#allocation3], 1 }
 0xa85   :  { %1177 = vsyncpa [#allocation3 + $0x1], 1 }
 0xa86   :  { %1178 = vsyncpa [#allocation4], 1 }
 0xa87   :  { %1180 = vsyncpa [#allocation4 + $0x1], 1 }

</bundles_post_ra>
